<compile_context>
chip_gen: v7x
topology: tpu7x:2x2x1
jax: 0.10.0
libtpu: 0.0.40
codegen_flags: <defaults>
</compile_context>

<pallas_src>
import jax
import jax.numpy as jnp
from jax.experimental import pallas as pl
from jax.experimental.pallas import tpu as pltpu

HIDDEN = 2 ** 8  # 256, from the module definition


def _round_up(x, m):
    return ((x + m - 1) // m) * m


def _mlp_kernel(xt_ref, w1_ref, b1_ref, w2_ref, b2_ref, o_ref):
    # fc1 (transposed): (H, D) @ (D, TB) -> (H, TB), f32 accumulation on the MXU.
    h = jnp.dot(w1_ref[...], xt_ref[...], preferred_element_type=jnp.float32)
    # bias + ReLU on the VPU; b1 is (H, 1), broadcast across the lane/batch axis.
    h = jnp.maximum(h + b1_ref[...], 0.0)
    # fc2 with out_features=1: VPU multiply + sublane reduce instead of a
    # near-empty MXU matmul.  Result (1, TB) is lane-dense.
    y = jnp.sum(h * w2_ref[...], axis=0, keepdims=True) + b2_ref[0]
    # Numerically stable sigmoid: only exponentiate non-positive values.
    #   y >= 0: 1 / (1 + exp(-y));   y < 0: exp(y) / (1 + exp(y))
    z = jnp.exp(-jnp.abs(y))
    num = jnp.where(y >= 0.0, 1.0, z)
    o_ref[...] = (num / (1.0 + z)).astype(o_ref.dtype)


def _vmem_limit_bytes():
    """Generation-aware scoped-VMEM limit (v7x has 64 MiB physical vs 128 MiB)."""
    try:
        cap = int(pltpu.get_tpu_info().vmem_capacity_bytes)
    except Exception:  # conservative fallback if the query is unavailable
        cap = 64 * 1024 * 1024
    return max(32 * 1024 * 1024, min((cap * 3) // 4, 96 * 1024 * 1024))


def custom_model_forward(x, w1, b1, w2, b2, *, block_b=8192):
    """Fused forward pass of CustomModel (PyTorch-layout parameters).

    x : (B, D) float32
    w1: (HIDDEN, D) float32   -- fc1.weight (out, in), PyTorch layout
    b1: (HIDDEN,)   float32   -- fc1.bias
    w2: (1, HIDDEN) float32   -- fc2.weight
    b2: (1,) / scalar float32 -- fc2.bias
    returns: (B, 1) float32
    """
    x = jnp.asarray(x, jnp.float32)
    B, D = x.shape
    w1 = jnp.asarray(w1, jnp.float32)
    H = w1.shape[0]
    assert w1.shape == (H, D), f"w1 must be (out={H}, in={D}); got {w1.shape}"
    assert H == HIDDEN
    b1c = jnp.asarray(b1, jnp.float32).reshape(H, 1)
    w2c = jnp.asarray(w2, jnp.float32).reshape(H, 1)
    b2v = jnp.asarray(b2, jnp.float32).reshape(1)

    vmem_limit = _vmem_limit_bytes()
    # VMEM budget: double-buffered residents + double-buffered x^T / out tiles
    # + ~3x (H, TB) f32 intermediates inside the kernel body.
    resident = 2 * (H * D * 4) + 2 * (H * 4) + 2 * (H * 4)
    per_row = 2 * (D * 4) + 2 * 4 + 3 * (H * 4)
    avail = vmem_limit - resident - (2 << 20)  # 2 MiB headroom
    max_tb = max(128, (avail // per_row) // 128 * 128)

    b_ceil = _round_up(B, 128)
    tb = min(_round_up(block_b, 128), b_ceil, max_tb)
    # For larger batches keep >= 2 grid steps so both v7x TensorCores get work.
    if b_ceil // 128 >= 2:
        tb = min(tb, _round_up(b_ceil // 2, 128))
    tb = max(tb, 128)

    b_pad = _round_up(B, tb)
    xt = x.T  # (D, B): batch on the lane axis -> lane-dense compute & output
    if b_pad != B:
        xt = jnp.pad(xt, ((0, 0), (0, b_pad - B)))
    grid = (b_pad // tb,)

    out = pl.pallas_call(
        _mlp_kernel,
        out_shape=jax.ShapeDtypeStruct((1, b_pad), jnp.float32),
        grid=grid,
        in_specs=[
            pl.BlockSpec((D, tb), lambda i: (0, i)),   # x^T tile (double-buffered)
            pl.BlockSpec((H, D), lambda i: (0, 0)),    # w1: VMEM-resident
            pl.BlockSpec((H, 1), lambda i: (0, 0)),    # b1: resident column
            pl.BlockSpec((H, 1), lambda i: (0, 0)),    # w2: resident column
            pl.BlockSpec(memory_space=pltpu.MemorySpace.SMEM),  # b2 scalar
        ],
        out_specs=pl.BlockSpec((1, tb), lambda i: (0, i)),
        compiler_params=pltpu.CompilerParams(
            dimension_semantics=("parallel",),
            vmem_limit_bytes=vmem_limit,
        ),
    )(xt, w1, b1c, w2c, b2v)

    return out[0, :B].reshape(B, 1)


def init_params(key, input_size):
    """PyTorch-layout params with nn.Linear's U(-1/sqrt(fan_in), 1/sqrt(fan_in)) init."""
    k1, k2, k3, k4 = jax.random.split(key, 4)
    bound1 = 1.0 / jnp.sqrt(input_size)
    bound2 = 1.0 / jnp.sqrt(HIDDEN)
    w1 = jax.random.uniform(k1, (HIDDEN, input_size), jnp.float32, -bound1, bound1)
    b1 = jax.random.uniform(k2, (HIDDEN,), jnp.float32, -bound1, bound1)
    w2 = jax.random.uniform(k3, (1, HIDDEN), jnp.float32, -bound2, bound2)
    b2 = jax.random.uniform(k4, (1,), jnp.float32, -bound2, bound2)
    return w1, b1, w2, b2


def _reference(x, w1, b1, w2, b2):
    h = jnp.maximum(x @ w1.T + b1.reshape(1, -1), 0.0)
    return jax.nn.sigmoid(h @ w2.T + b2.reshape(1, -1))


if __name__ == "__main__":
    key = jax.random.PRNGKey(0)
    kx, kp, kx2 = jax.random.split(key, 3)

    batch = 8
    input_size = 32  # consistent with nn.Linear(input_size, 256)

    x = jax.random.normal(kx, (batch, input_size), jnp.float32)
    w1, b1, w2, b2 = init_params(kp, input_size)

    out = jax.block_until_ready(custom_model_forward(x, w1, b1, w2, b2))
    ref = _reference(x, w1, b1, w2, b2)
    assert out.shape == (batch, 1)
    assert jnp.allclose(out, ref, atol=2e-3, rtol=2e-3)

    # Exercise the multi-tile grid + batch-padding path (B not a tile multiple).
    x2 = jax.random.normal(kx2, (300, input_size), jnp.float32)
    out2 = jax.block_until_ready(custom_model_forward(x2, w1, b1, w2, b2, block_b=128))
    ref2 = _reference(x2, w1, b1, w2, b2)
    assert out2.shape == (300, 1)
    assert jnp.allclose(out2, ref2, atol=2e-3, rtol=2e-3)

    print("KERNEL_OK")
</pallas_src>

<mosaic_0001>
module attributes {stable_mosaic.version = 11 : i64} {
  func.func @_mlp_kernel(%arg0: i32, %arg1: memref<32x128xf32, #tpu.memory_space<vmem>>, %arg2: memref<256x32xf32, #tpu.memory_space<vmem>>, %arg3: memref<256x1xf32, #tpu.memory_space<vmem>>, %arg4: memref<256x1xf32, #tpu.memory_space<vmem>>, %arg5: memref<1xf32, #tpu.memory_space<smem>>, %arg6: memref<1x128xf32, #tpu.memory_space<vmem>>) attributes {dimension_semantics = [#tpu.dimension_semantics<parallel>], iteration_bounds = array<i64: 1>, scalar_prefetch = 0 : i64, scratch_operands = 0 : i64, tpu.core_type = #tpu.core_type<tc>, window_params = [{transform_indices = @transform_0, window_bounds = array<i64: 32, 128>}, {pipeline_mode = #tpu.pipeline_mode<synchronous>, transform_indices = @transform_1, window_bounds = array<i64: 256, 32>}, {pipeline_mode = #tpu.pipeline_mode<synchronous>, transform_indices = @transform_2, window_bounds = array<i64: 256, 1>}, {pipeline_mode = #tpu.pipeline_mode<synchronous>, transform_indices = @transform_3, window_bounds = array<i64: 256, 1>}, {transform_indices = @transform_4, window_bounds = array<i64: 1>}, {transform_indices = @transform_5, window_bounds = array<i64: 1, 128>}]} {
    %c0 = arith.constant 0 : index
    %c0_0 = arith.constant 0 : index
    %0 = vector.load %arg2[%c0, %c0_0] : memref<256x32xf32, #tpu.memory_space<vmem>>, vector<256x32xf32>
    %c0_1 = arith.constant 0 : index
    %c0_2 = arith.constant 0 : index
    %1 = vector.load %arg1[%c0_1, %c0_2] : memref<32x128xf32, #tpu.memory_space<vmem>>, vector<32x128xf32>
    %cst = arith.constant dense<0.000000e+00> : vector<256x128xf32>
    %2 = tpu.matmul %0, %1, %cst {dimension_numbers = #tpu.dot_dimension_numbers<[1], [0], [0], [1], [0, 0, 1, 1], [], []>} : vector<256x32xf32>, vector<32x128xf32>, vector<256x128xf32> -> vector<256x128xf32>
    %c0_3 = arith.constant 0 : index
    %c0_4 = arith.constant 0 : index
    %3 = vector.load %arg3[%c0_3, %c0_4] : memref<256x1xf32, #tpu.memory_space<vmem>>, vector<256x1xf32>
    %4 = vector.broadcast %3 : vector<256x1xf32> to vector<256x128xf32>
    %5 = arith.addf %2, %4 : vector<256x128xf32>
    %cst_5 = arith.constant 0.000000e+00 : f32
    %6 = vector.broadcast %cst_5 : f32 to vector<256x128xf32>
    %7 = arith.maximumf %5, %6 : vector<256x128xf32>
    %c0_6 = arith.constant 0 : index
    %c0_7 = arith.constant 0 : index
    %8 = vector.load %arg4[%c0_6, %c0_7] : memref<256x1xf32, #tpu.memory_space<vmem>>, vector<256x1xf32>
    %9 = vector.broadcast %8 : vector<256x1xf32> to vector<256x128xf32>
    %10 = arith.mulf %7, %9 : vector<256x128xf32>
    %cst_8 = arith.constant dense<0.000000e+00> : vector<128xf32>
    %11 = vector.multi_reduction <add>, %10, %cst_8 [0] : vector<256x128xf32> to vector<128xf32>
    %12 = vector.shape_cast %11 : vector<128xf32> to vector<1x128xf32>
    %c0_9 = arith.constant 0 : index
    %13 = memref.load %arg5[%c0_9] : memref<1xf32, #tpu.memory_space<smem>>
    %14 = vector.broadcast %13 : f32 to vector<1x128xf32>
    %15 = arith.addf %12, %14 : vector<1x128xf32>
    %16 = math.absf %15 : vector<1x128xf32>
    %cst_10 = arith.constant 0.000000e+00 : f32
    %17 = vector.broadcast %cst_10 : f32 to vector<1x128xf32>
    %18 = arith.subf %17, %16 : vector<1x128xf32>
    %19 = math.exp %18 : vector<1x128xf32>
    %cst_11 = arith.constant 0.000000e+00 : f32
    %20 = vector.broadcast %cst_11 : f32 to vector<1x128xf32>
    %21 = arith.cmpf oge, %15, %20 : vector<1x128xf32>
    %cst_12 = arith.constant 1.000000e+00 : f32
    %22 = vector.broadcast %cst_12 : f32 to vector<1x128xf32>
    %23 = arith.select %21, %22, %19 : vector<1x128xi1>, vector<1x128xf32>
    %cst_13 = arith.constant 1.000000e+00 : f32
    %24 = vector.broadcast %cst_13 : f32 to vector<1x128xf32>
    %25 = arith.addf %24, %19 : vector<1x128xf32>
    %26 = arith.divf %23, %25 : vector<1x128xf32>
    %c0_14 = arith.constant 0 : index
    %c0_15 = arith.constant 0 : index
    %27 = vector.load %arg6[%c0_14, %c0_15] : memref<1x128xf32, #tpu.memory_space<vmem>>, vector<1x128xf32>
    tpu.vector_store %arg6[%c0_14, %c0_15], %26 {strides = array<i32>} : memref<1x128xf32, #tpu.memory_space<vmem>>, vector<1x128xf32>,
    return
  }
  func.func @transform_0(%arg0: i32) -> (i32, i32) {
    %c0_i32 = arith.constant 0 : i32
    %c0_i32_0 = arith.constant 0 : i32
    return %c0_i32, %arg0 : i32, i32
  }
  func.func @transform_1(%arg0: i32) -> (i32, i32) {
    %c0_i32 = arith.constant 0 : i32
    %c0_i32_0 = arith.constant 0 : i32
    %c0_i32_1 = arith.constant 0 : i32
    return %c0_i32, %c0_i32_0 : i32, i32
  }
  func.func @transform_2(%arg0: i32) -> (i32, i32) {
    %c0_i32 = arith.constant 0 : i32
    %c0_i32_0 = arith.constant 0 : i32
    %c0_i32_1 = arith.constant 0 : i32
    return %c0_i32, %c0_i32_0 : i32, i32
  }
  func.func @transform_3(%arg0: i32) -> (i32, i32) {
    %c0_i32 = arith.constant 0 : i32
    %c0_i32_0 = arith.constant 0 : i32
    %c0_i32_1 = arith.constant 0 : i32
    return %c0_i32, %c0_i32_0 : i32, i32
  }
  func.func @transform_4(%arg0: i32) -> i32 {
    %c0_i32 = arith.constant 0 : i32
    %c0_i32_0 = arith.constant 0 : i32
    return %c0_i32 : i32
  }
  func.func @transform_5(%arg0: i32) -> (i32, i32) {
    %c0_i32 = arith.constant 0 : i32
    %c0_i32_0 = arith.constant 0 : i32
    return %c0_i32, %arg0 : i32, i32
  }
}

</mosaic_0001>

<bundles_post_ra>
// kernel: tpu_custom_call.1
= control target key start
LH: loop header
LB: loop body
LE: loop exit
PB: predicated region body
PF: predicated region fallthrough
CT: control target
= control target key end

     0   :  { %v1060_v3 = vmov 0   ;;  %vm250_vm0 = vcmask 261120   ;;  %s1610_s0 = inlined_call_operand.vmem [shape: f32[32,128], index: 0, kind: input, shape index: {}]   ;;  %s1611_s1 = inlined_call_operand.vmem [shape: f32[256,32], index: 1, kind: input, shape index: {}]   ;;  %s1612_s2 = inlined_call_operand.vmem [shape: f32[256,1], index: 2, kind: input, shape index: {}]   ;;  %s1613_s3 = inlined_call_operand.vmem [shape: f32[256,1], index: 3, kind: input, shape index: {}]   ;;  %s1614_s4 = inlined_call_operand.<no memory space> [shape: f32[1], index: 4, kind: input, shape index: {}]   ;;  %s1615_s5 = inlined_call_operand.hbm [shape: f32[1,128], index: 5, kind: output, shape index: {}]  }
   0x1   :  { %v60_v0 = vld [vmem:[%s1612_s2 + $0x10] sm:$0xff]  ;;  %v58_v1 = vld [vmem:[%s1612_s2] sm:$0xff]  ;;  %1031 = vset.pattern.permute.xlu1 %v1060_v3  ;;  %1030 = vset.pattern.permute.xlu0 %v1060_v3  ;;  %v55_v4 = vld [vmem:[%s1610_s0 + $0x8] sm:$0xff] }
   0x2   :  { %v54_v2 = vld [vmem:[%s1610_s0] sm:$0xff]  ;;  %102 = vperm.xlu1 %1031, %v60_v0   ;;  %92 = vperm.xlu0 %1030, %v58_v1   ;;  %v56_v6 = vld [vmem:[%s1610_s0 + $0x10] sm:$0xff]  ;;  %v57_v7 = vld [vmem:[%s1610_s0 + $0x18] sm:$0xff] }
   0x3   :  { %v1016_v5 = vpack.c.bf16 %v55_v4, %v54_v2  ;;  %v61_v8 = vld [vmem:[%s1612_s2 + $0x18] sm:$0xff]  ;;  %v59_v9 = vld [vmem:[%s1612_s2 + $0x8] sm:$0xff]  ;;  %v1020_v10 = vpack.c.bf16 %v57_v7, %v56_v6  ;;  %v22_v11 = vld [vmem:[%s1611_s1] sm:$0xff] }
   0x4   :  { %v38_v12 = vld [vmem:[%s1611_s1 + $0x80] sm:$0xff]  ;;  %v63_v13 = vld [vmem:[%s1612_s2 + $0x28] sm:$0xff]  ;;  %968 = vmatprep.mubr.msk.f32.mxu0 %vm250_vm0, %v22_v11  ;;  %v24_v17 = vld [vmem:[%s1611_s1 + $0x10] sm:$0xff] }
   0x5   :  { %1017 = vmatprep.subr.bf16.mxu0 %v1016_v5  ;;  %1024 = vmatprep.subr.bf16.mxu1 %v1016_v5  ;;  %v62_v14 = vld [vmem:[%s1612_s2 + $0x20] sm:$0xff]  ;;  %v23_v15 = vld [vmem:[%s1611_s1 + $0x8] sm:$0xff]  ;;  %v40_v18 = vld [vmem:[%s1611_s1 + $0x90] sm:$0xff] }
   0x6   :  { %1019 = vmatpush3.bf16.msra.mxu0 %v1016_v5  ;;  %1026 = vmatpush3.bf16.msra.mxu1 %v1016_v5  ;;  %v39_v16 = vld [vmem:[%s1611_s1 + $0x88] sm:$0xff]  ;;  %v65_v19 = vld [vmem:[%s1612_s2 + $0x38] sm:$0xff]  ;;  %v64_v20 = vld [vmem:[%s1612_s2 + $0x30] sm:$0xff] }
   0x7   :  { %107 = vperm.xlu1 %1031, %v61_v8   ;;  %97 = vperm.xlu0 %1030, %v59_v9   ;;  %v25_v21 = vld [vmem:[%s1611_s1 + $0x18] sm:$0xff]  ;;  %v26_v23 = vld [vmem:[%s1611_s1 + $0x20] sm:$0xff]  ;;  %v67_v25 = vld [vmem:[%s1612_s2 + $0x48] sm:$0xff] }
   0x8   :  { %1021 = vmatprep.subr.bf16.mxu0 %v1020_v10  ;;  %1025 = vmatprep.subr.bf16.mxu1 %v1020_v10  ;;  %v41_v22 = vld [vmem:[%s1611_s1 + $0x98] sm:$0xff]  ;;  %v42_v24 = vld [vmem:[%s1611_s1 + $0xa0] sm:$0xff]  ;;  %v27_v27 = vld [vmem:[%s1611_s1 + $0x28] sm:$0xff] }
   0x9   :  { %992 = vmatprep.mubr.msk.f32.mxu1 %vm250_vm0, %v38_v12  ;;  %v66_v26 = vld [vmem:[%s1612_s2 + $0x40] sm:$0xff]  ;;  %v43_v28 = vld [vmem:[%s1611_s1 + $0xa8] sm:$0xff]  ;;  %v28_v29 = vld [vmem:[%s1611_s1 + $0x30] sm:$0xff] }
   0xa   :  { %1023 = vmatpush3.bf16.msra.mxu0 %v1020_v10  ;;  %1027 = vmatpush3.bf16.msra.mxu1 %v1020_v10  ;;  %v44_v30 = vld [vmem:[%s1611_s1 + $0xb0] sm:$0xff]  ;;  %v69_v31 = vld [vmem:[%s1612_s2 + $0x58] sm:$0xff]  ;;  %v30_v35 = vld [vmem:[%s1611_s1 + $0x40] sm:$0xff] }
   0xb   :  { %117 = vperm.xlu1 %1031, %v63_v13   ;;  %112 = vperm.xlu0 %1030, %v62_v14   ;;  %v68_v32 = vld [vmem:[%s1612_s2 + $0x50] sm:$0xff]  ;;  %v29_v33 = vld [vmem:[%s1611_s1 + $0x38] sm:$0xff]  ;;  %v46_v36 = vld [vmem:[%s1611_s1 + $0xc0] sm:$0xff] }
   0xc   :  { %v45_v34 = vld [vmem:[%s1611_s1 + $0xb8] sm:$0xff]  ;;  %v71_v37 = vld [vmem:[%s1612_s2 + $0x68] sm:$0xff]  ;;  %v70_v38 = vld [vmem:[%s1612_s2 + $0x60] sm:$0xff] }
   0xd   :  { %969 = vmatmul.mubr.msk.f32.vlgmr.msra.gmra.mrb[0].mxu0 %vm250_vm0, %v23_v15  ;;  %993 = vmatmul.mubr.msk.f32.vlgmr.msra.gmra.mrb[0].mxu1 %vm250_vm0, %v39_v16  ;;  %v31_v39 = vld [vmem:[%s1611_s1 + $0x48] sm:$0xff]  ;;  %v32_v41 = vld [vmem:[%s1611_s1 + $0x50] sm:$0xff]  ;;  %v73_v43 = vld [vmem:[%s1612_s2 + $0x78] sm:$0xff] }
   0xe   :  { %971 = vmatprep.mubr.msk.f32.mxu0 %vm250_vm0, %v24_v17  ;;  %995 = vmatprep.mubr.msk.f32.mxu1 %vm250_vm0, %v40_v18  ;;  %v47_v40 = vld [vmem:[%s1611_s1 + $0xc8] sm:$0xff]  ;;  %v48_v42 = vld [vmem:[%s1611_s1 + $0xd0] sm:$0xff]  ;;  %v33_v45 = vld [vmem:[%s1611_s1 + $0x58] sm:$0xff] }
   0xf   :  { %127 = vperm.xlu1 %1031, %v65_v19   ;;  %122 = vperm.xlu0 %1030, %v64_v20   ;;  %v72_v44 = vld [vmem:[%s1612_s2 + $0x70] sm:$0xff]  ;;  %v49_v46 = vld [vmem:[%s1611_s1 + $0xd8] sm:$0xff]  ;;  %v34_v47 = vld [vmem:[%s1611_s1 + $0x60] sm:$0xff] }
  0x10   :  { %v50_v48 = vld [vmem:[%s1611_s1 + $0xe0] sm:$0xff]  ;;  %v75_v49 = vld [vmem:[%s1612_s2 + $0x88] sm:$0xff] }
  0x11   :  { %972 = vmatmul.mubr.msk.f32.gmra.mrb[2].mxu0 %vm250_vm0, %v25_v21  ;;  %996 = vmatmul.mubr.msk.f32.gmra.mrb[2].mxu1 %vm250_vm0, %v41_v22  ;;  %v74_v50 = vld [vmem:[%s1612_s2 + $0x80] sm:$0xff]  ;;  %v35_v51 = vld [vmem:[%s1611_s1 + $0x68] sm:$0xff] }
  0x12   :  { %974 = vmatprep.mubr.msk.f32.mxu0 %vm250_vm0, %v26_v23  ;;  %998 = vmatprep.mubr.msk.f32.mxu1 %vm250_vm0, %v42_v24  ;;  %v51_v52 = vld [vmem:[%s1611_s1 + $0xe8] sm:$0xff] }
  0x13   :  { %137 = vperm.xlu1 %1031, %v67_v25   ;;  %132 = vperm.xlu0 %1030, %v66_v26  }
  0x15   :  { %975 = vmatmul.mubr.msk.f32.gmra.mrb[4].mxu0 %vm250_vm0, %v27_v27  ;;  %999 = vmatmul.mubr.msk.f32.gmra.mrb[4].mxu1 %vm250_vm0, %v43_v28 }
  0x16   :  { %977 = vmatprep.mubr.msk.f32.mxu0 %vm250_vm0, %v28_v29  ;;  %1001 = vmatprep.mubr.msk.f32.mxu1 %vm250_vm0, %v44_v30 }
  0x17   :  { %147 = vperm.xlu1 %1031, %v69_v31   ;;  %142 = vperm.xlu0 %1030, %v68_v32  }
  0x19   :  { %978 = vmatmul.mubr.msk.f32.gmra.mrb[6].mxu0 %vm250_vm0, %v29_v33  ;;  %1002 = vmatmul.mubr.msk.f32.gmra.mrb[6].mxu1 %vm250_vm0, %v45_v34 }
  0x1a   :  { %980 = vmatprep.mubr.msk.f32.mxu0 %vm250_vm0, %v30_v35  ;;  %1004 = vmatprep.mubr.msk.f32.mxu1 %vm250_vm0, %v46_v36 }
  0x1b   :  { %157 = vperm.xlu1 %1031, %v71_v37   ;;  %152 = vperm.xlu0 %1030, %v70_v38  }
  0x1d   :  { %981 = vmatmul.mubr.msk.f32.gmra.mrb[8].mxu0 %vm250_vm0, %v31_v39  ;;  %1005 = vmatmul.mubr.msk.f32.gmra.mrb[8].mxu1 %vm250_vm0, %v47_v40 }
  0x1e   :  { %983 = vmatprep.mubr.msk.f32.mxu0 %vm250_vm0, %v32_v41  ;;  %1007 = vmatprep.mubr.msk.f32.mxu1 %vm250_vm0, %v48_v42 }
  0x1f   :  { %167 = vperm.xlu1 %1031, %v73_v43   ;;  %162 = vperm.xlu0 %1030, %v72_v44  }
  0x21   :  { %984 = vmatmul.mubr.msk.f32.gmra.mrb[10].mxu0 %vm250_vm0, %v33_v45  ;;  %1008 = vmatmul.mubr.msk.f32.gmra.mrb[10].mxu1 %vm250_vm0, %v49_v46 }
  0x22   :  { %986 = vmatprep.mubr.msk.f32.mxu0 %vm250_vm0, %v34_v47  ;;  %1010 = vmatprep.mubr.msk.f32.mxu1 %vm250_vm0, %v50_v48 }
  0x23   :  { %11 = vsyncpa [#allocation4], 0  ;;  %177 = vperm.xlu1 %1031, %v75_v49   ;;  %172 = vperm.xlu0 %1030, %v74_v50   ;;  %v36_v53 = vld [vmem:[%s1611_s1 + $0x70] sm:$0xff]  ;;  %v77_v55 = vld [vmem:[%s1612_s2 + $0x98] sm:$0xff]  ;;  %s1061_s7 = smov [#allocation3]  }
  0x24   :  { %v52_v54 = vld [vmem:[%s1611_s1 + $0xf0] sm:$0xff]  ;;  %v37_v57 = vld [vmem:[%s1611_s1 + $0x78] sm:$0xff]  ;;  %v605_v59 = vld [vmem:[%s1613_s3 + $0x8] sm:$0xff]  ;;  %s884_s8 = sshll.u32 %s1061_s7, 4  ;;  %s885_s8 = int_to_ptr.vmem [resolvable:$true] %s884_s8 }
  0x25   :  { %v76_v56 = vld [vmem:[%s1612_s2 + $0x90] sm:$0xff]  ;;  %987 = vmatmul.mubr.msk.f32.gmra.mrb[12].mxu0 %vm250_vm0, %v35_v51  ;;  %1011 = vmatmul.mubr.msk.f32.gmra.mrb[12].mxu1 %vm250_vm0, %v51_v52  ;;  %v53_v58 = vld [vmem:[%s1611_s1 + $0xf8] sm:$0xff]  ;;  %v604_v60 = vld [vmem:[%s1613_s3] sm:$0xff]  ;;  %s1036_s9 = scalar_lea.vmem %s885_s8, 16  ;;  %p1041_p1 = scmp.lt.s32.totalorder %s885_s8, %s885_s8 }
  0x26   :  { %989 = vmatprep.mubr.msk.f32.mxu0 %vm250_vm0, %v36_v53  ;;  %1013 = vmatprep.mubr.msk.f32.mxu1 %vm250_vm0, %v52_v54  ;;  %v607_v61 = vld [vmem:[%s1613_s3 + $0x18] sm:$0xff]  ;;  %v606_v62 = vld [vmem:[%s1613_s3 + $0x10] sm:$0xff]  ;;  %v609_v63 = vld [vmem:[%s1613_s3 + $0x28] sm:$0xff]  ;;  %p1037_p0 = scmp.ne.s32.totalorder %s885_s8, %s1036_s9 }
  0x27   :  { %187 = vperm.xlu1 %1031, %v77_v55   ;;  %182 = vperm.xlu0 %1030, %v76_v56   ;;  %v608_v0 = vld [vmem:[%s1613_s3 + $0x20] sm:$0xff]  ;;  %v611_v1 = vld [vmem:[%s1613_s3 + $0x38] sm:$0xff]  ;;  %v610_v2 = vld [vmem:[%s1613_s3 + $0x30] sm:$0xff] }
  0x28   :  { %v613_v3 = vld [vmem:[%s1613_s3 + $0x48] sm:$0xff]  ;;  %v612_v4 = vld [vmem:[%s1613_s3 + $0x40] sm:$0xff]  ;;  %v615_v5 = vld [vmem:[%s1613_s3 + $0x58] sm:$0xff] }
  0x29   :  { %990 = vmatmul.mubr.msk.f32.gmra.mrb[14].mxu0 %vm250_vm0, %v37_v57  ;;  %1014 = vmatmul.mubr.msk.f32.gmra.mrb[14].mxu1 %vm250_vm0, %v53_v58  ;;  %v614_v6 = vld [vmem:[%s1613_s3 + $0x50] sm:$0xff]  ;;  %v617_v7 = vld [vmem:[%s1613_s3 + $0x68] sm:$0xff]  ;;  %v616_v8 = vld [vmem:[%s1613_s3 + $0x60] sm:$0xff] }
  0x2a   :  { %v619_v9 = vld [vmem:[%s1613_s3 + $0x78] sm:$0xff]  ;;  %v618_v10 = vld [vmem:[%s1613_s3 + $0x70] sm:$0xff]  ;;  %v621_v11 = vld [vmem:[%s1613_s3 + $0x88] sm:$0xff] }
  0x2b   :  { %643 = vperm.xlu1 %1031, %v605_v59   ;;  %638 = vperm.xlu0 %1030, %v604_v60   ;;  %v620_v12 = vld [vmem:[%s1613_s3 + $0x80] sm:$0xff]  ;;  %v622_v13 = vld [vmem:[%s1613_s3 + $0x90] sm:$0xff]  ;;  %v623_v15 = vld [vmem:[%s1613_s3 + $0x98] sm:$0xff] }
  0x2c   :  { %v78_v14 = vld [vmem:[%s1612_s2 + $0xa0] sm:$0xff]  ;;  %v79_v16 = vld [vmem:[%s1612_s2 + $0xa8] sm:$0xff]  ;;  %v80_v18 = vld [vmem:[%s1612_s2 + $0xb0] sm:$0xff] }
  0x2d   :  { %v624_v17 = vld [vmem:[%s1613_s3 + $0xa0] sm:$0xff]  ;;  %v625_v19 = vld [vmem:[%s1613_s3 + $0xa8] sm:$0xff]  ;;  %v81_v20 = vld [vmem:[%s1612_s2 + $0xb8] sm:$0xff] }
  0x2e   :  { %v626_v21 = vld [vmem:[%s1613_s3 + $0xb0] sm:$0xff]  ;;  %v82_v22 = vld [vmem:[%s1612_s2 + $0xc0] sm:$0xff]  ;;  %v627_v23 = vld [vmem:[%s1613_s3 + $0xb8] sm:$0xff] }
  0x2f   :  { %653 = vperm.xlu1 %1031, %v607_v61   ;;  %648 = vperm.xlu0 %1030, %v606_v62   ;;  %v83_v24 = vld [vmem:[%s1612_s2 + $0xc8] sm:$0xff]  ;;  %v628_v25 = vld [vmem:[%s1613_s3 + $0xc0] sm:$0xff]  ;;  %v84_v26 = vld [vmem:[%s1612_s2 + $0xd0] sm:$0xff] }
  0x30   :  { %v629_v27 = vld [vmem:[%s1613_s3 + $0xc8] sm:$0xff]  ;;  %v85_v28 = vld [vmem:[%s1612_s2 + $0xd8] sm:$0xff]  ;;  %v630_v29 = vld [vmem:[%s1613_s3 + $0xd0] sm:$0xff] }
  0x31   :  { %v86_v30 = vld [vmem:[%s1612_s2 + $0xe0] sm:$0xff]  ;;  %v631_v31 = vld [vmem:[%s1613_s3 + $0xd8] sm:$0xff]  ;;  %v87_v32 = vld [vmem:[%s1612_s2 + $0xe8] sm:$0xff] }
  0x32   :  { %v632_v33 = vld [vmem:[%s1613_s3 + $0xe0] sm:$0xff]  ;;  %v88_v34 = vld [vmem:[%s1612_s2 + $0xf0] sm:$0xff]  ;;  %v633_v35 = vld [vmem:[%s1613_s3 + $0xe8] sm:$0xff] }
  0x33   :  { %663 = vperm.xlu1 %1031, %v609_v63   ;;  %658 = vperm.xlu0 %1030, %v608_v0   ;;  %v89_v36 = vld [vmem:[%s1612_s2 + $0xf8] sm:$0xff]  ;;  %v634_v38 = vld [vmem:[%s1613_s3 + $0xf0] sm:$0xff] }
  0x34   :  { %v635_v37 = vld [vmem:[%s1613_s3 + $0xf8] sm:$0xff] }
  0x37   :  { %673 = vperm.xlu1 %1031, %v611_v1   ;;  %668 = vperm.xlu0 %1030, %v610_v2  }
  0x3b   :  { %683 = vperm.xlu1 %1031, %v613_v3   ;;  %678 = vperm.xlu0 %1030, %v612_v4  }
  0x3f   :  { %693 = vperm.xlu1 %1031, %v615_v5   ;;  %688 = vperm.xlu0 %1030, %v614_v6  }
  0x43   :  { %703 = vperm.xlu1 %1031, %v617_v7   ;;  %698 = vperm.xlu0 %1030, %v616_v8  }
  0x47   :  { %713 = vperm.xlu1 %1031, %v619_v9   ;;  %708 = vperm.xlu0 %1030, %v618_v10  }
  0x4b   :  { %723 = vperm.xlu1 %1031, %v621_v11   ;;  %718 = vperm.xlu0 %1030, %v620_v12  }
  0x4f   :  { %728 = vperm.xlu1 %1031, %v622_v13   ;;  %192 = vperm.xlu0 %1030, %v78_v14  }
  0x53   :  { %733 = vperm.xlu1 %1031, %v623_v15   ;;  %197 = vperm.xlu0 %1030, %v79_v16  }
  0x57   :  { %738 = vperm.xlu1 %1031, %v624_v17   ;;  %202 = vperm.xlu0 %1030, %v80_v18  }
  0x5b   :  { %743 = vperm.xlu1 %1031, %v625_v19   ;;  %207 = vperm.xlu0 %1030, %v81_v20  }
  0x5f   :  { %748 = vperm.xlu1 %1031, %v626_v21   ;;  %212 = vperm.xlu0 %1030, %v82_v22  }
  0x63   :  { %753 = vperm.xlu1 %1031, %v627_v23   ;;  %217 = vperm.xlu0 %1030, %v83_v24  }
  0x67   :  { %758 = vperm.xlu1 %1031, %v628_v25   ;;  %222 = vperm.xlu0 %1030, %v84_v26  }
  0x6b   :  { %763 = vperm.xlu1 %1031, %v629_v27   ;;  %227 = vperm.xlu0 %1030, %v85_v28  }
  0x6f   :  { %768 = vperm.xlu1 %1031, %v630_v29   ;;  %232 = vperm.xlu0 %1030, %v86_v30  }
  0x73   :  { %773 = vperm.xlu1 %1031, %v631_v31   ;;  %237 = vperm.xlu0 %1030, %v87_v32  }
  0x77   :  { %778 = vperm.xlu1 %1031, %v632_v33   ;;  %242 = vperm.xlu0 %1030, %v88_v34  }
  0x7b   :  { %783 = vperm.xlu1 %1031, %v633_v35   ;;  %247 = vperm.xlu0 %1030, %v89_v36  }
  0x7f   :  { %793 = vperm.xlu1 %1031, %v635_v37   ;;  %788 = vperm.xlu0 %1030, %v634_v38  }
  0x81   :  { %v103_v39 = vpop.permute.xlu1 %102  ;;  %v93_v40 = vpop.permute.xlu0 %92 }
  0x86   :  { %v108_v41 = vpop.permute.xlu1 %107  ;;  %v98_v42 = vpop.permute.xlu0 %97 }
  0x8a   :  { %v1424_v43 = vpop.permute.xlu1 %117  ;;  %v1426_v44 = vpop.permute.xlu0 %112 }
  0x8e   :  { %v1428_v45 = vpop.permute.xlu1 %127  ;;  %v1430_v46 = vpop.permute.xlu0 %122 }
  0x92   :  { %v1432_v47 = vpop.permute.xlu1 %137  ;;  %v1434_v48 = vpop.permute.xlu0 %132 }
  0x96   :  { %v1436_v49 = vpop.permute.xlu1 %147  ;;  %v1438_v50 = vpop.permute.xlu0 %142 }
  0x9a   :  { %v1440_v51 = vpop.permute.xlu1 %157  ;;  %v1442_v52 = vpop.permute.xlu0 %152 }
  0x9e   :  { %v1444_v53 = vpop.permute.xlu1 %167  ;;  %v1446_v54 = vpop.permute.xlu0 %162 }
  0xa2   :  { %v1448_v55 = vpop.permute.xlu1 %177  ;;  %v1450_v56 = vpop.permute.xlu0 %172 }
  0xa6   :  { %v1452_v57 = vpop.permute.xlu1 %187  ;;  %v1454_v58 = vpop.permute.xlu0 %182 }
  0xaa   :  { %v644_v59 = vpop.permute.xlu1 %643  ;;  %v639_v60 = vpop.permute.xlu0 %638 }
  0xae   :  { %v654_v61 = vpop.permute.xlu1 %653  ;;  %v649_v62 = vpop.permute.xlu0 %648 }
  0xb2   :  { %v664_v63 = vpop.permute.xlu1 %663  ;;  %v659_v0 = vpop.permute.xlu0 %658 }
  0xb6   :  { %v1456_v1 = vpop.permute.xlu1 %673  ;;  %v1458_v2 = vpop.permute.xlu0 %668 }
  0xba   :  { %v1460_v3 = vpop.permute.xlu1 %683  ;;  %v1462_v4 = vpop.permute.xlu0 %678 }
  0xbe   :  { %v1464_v5 = vpop.permute.xlu1 %693  ;;  %v1466_v6 = vpop.permute.xlu0 %688 }
  0xc2   :  { %v1468_v7 = vpop.permute.xlu1 %703  ;;  %v1470_v8 = vpop.permute.xlu0 %698 }
  0xc6   :  { %v1472_v9 = vpop.permute.xlu1 %713  ;;  %v1474_v10 = vpop.permute.xlu0 %708 }
  0xca   :  { %v1476_v11 = vpop.permute.xlu1 %723  ;;  %v1478_v12 = vpop.permute.xlu0 %718 }
  0xce   :  { %v1480_v13 = vpop.permute.xlu1 %728  ;;  %v1482_v14 = vpop.permute.xlu0 %192 }
  0xd2   :  { %v1484_v15 = vpop.permute.xlu1 %733  ;;  %v1486_v16 = vpop.permute.xlu0 %197 }
  0xd6   :  { %v1488_v17 = vpop.permute.xlu1 %738  ;;  %v1490_v18 = vpop.permute.xlu0 %202 }
  0xda   :  { %v1496_v25 = vpop.permute.xlu1 %743  ;;  %v1498_v26 = vpop.permute.xlu0 %207 }
  0xdb   :  { %1616 = vst [vmem:[#allocation6_spill] sm:$0xff] %v1496_v25 }
  0xe0   :  { %v970_v19 = vpop.f32.mrb[0].mxu0  ;;  %v1492_v20 = vpop.f32.mrb[0].mxu1 }
  0xe1   :  { %v419_v21 = vadd.f32 %v970_v19, %v98_v42  ;;  %v413_v22 = vpop.f32.mrb[1].mxu0  ;;  %v1494_v23 = vpop.f32.mrb[1].mxu1 }
  0xe2   :  { %v414_v24 = vadd.f32 %v413_v22, %v93_v40 }
  0xe3   :  { %v573_v27 = vmax.f32 %v419_v21, 0.0 }
  0xe4   :  { %v572_v28 = vmax.f32 %v414_v24, 0.0  ;;  %v973_v29 = vpop.f32.mrb[2].mxu0  ;;  %v1500_v30 = vpop.f32.mrb[2].mxu1 }
  0xe5   :  { %v797_v31 = vmul.f32 %v644_v59, %v573_v27  ;;  %v429_v32 = vadd.f32 %v973_v29, %v108_v41  ;;  %v423_v33 = vpop.f32.mrb[3].mxu0  ;;  %v1502_v34 = vpop.f32.mrb[3].mxu1 }
  0xe6   :  { %v796_v35 = vmul.f32 %v639_v60, %v572_v28  ;;  %v424_v36 = vadd.f32 %v423_v33, %v103_v39  ;;  %v1510_v41 = vpop.permute.xlu1 %748  ;;  %v1512_v27 = vpop.permute.xlu0 %212 }
  0xe7   :  { %v575_v38 = vmax.f32 %v429_v32, 0.0  ;;  %1617 = vst [vmem:[#allocation7_spill] sm:$0xff] %v1510_v41 }
  0xe8   :  { %v828_v37 = vadd.f32 %v797_v31, %v796_v35  ;;  %v574_v42 = vmax.f32 %v424_v36, 0.0  ;;  %v976_v40 = vpop.f32.mrb[4].mxu0  ;;  %v1504_v19 = vpop.f32.mrb[4].mxu1 }
  0xe9   :  { %v439_v22 = vadd.f32 %v976_v40, %v1424_v43  ;;  %v433_v21 = vpop.f32.mrb[5].mxu0  ;;  %v1507_v24 = vpop.f32.mrb[5].mxu1  ;;  %v799_v60 = vmul.f32 %v654_v61, %v575_v38 }
  0xea   :  { %v798_v25 = vmul.f32 %v649_v62, %v574_v42  ;;  %v434_v59 = vadd.f32 %v433_v21, %v1426_v44 }
  0xeb   :  { %v577_v28 = vmax.f32 %v439_v22, 0.0 }
  0xec   :  { %v829_v39 = vadd.f32 %v828_v37, %v798_v25  ;;  %v576_v29 = vmax.f32 %v434_v59, 0.0  ;;  %v979_v31 = vpop.f32.mrb[6].mxu0  ;;  %v1514_v32 = vpop.f32.mrb[6].mxu1 }
  0xed   :  { %v449_v33 = vadd.f32 %v979_v31, %v1428_v45  ;;  %v443_v43 = vpop.f32.mrb[7].mxu0  ;;  %v1517_v35 = vpop.f32.mrb[7].mxu1  ;;  %v801_v42 = vmul.f32 %v664_v63, %v577_v28 }
  0xee   :  { %v800_v36 = vmul.f32 %v659_v0, %v576_v29  ;;  %v830_v62 = vadd.f32 %v829_v39, %v799_v60  ;;  %v444_v44 = vadd.f32 %v443_v43, %v1430_v46  ;;  %v1527_v60 = vpop.permute.xlu1 %753  ;;  %v1529_v46 = vpop.permute.xlu0 %217 }
  0xef   :  { %v579_v21 = vmax.f32 %v449_v33, 0.0 }
  0xf0   :  { %v831_v40 = vadd.f32 %v830_v62, %v800_v36  ;;  %v578_v41 = vmax.f32 %v444_v44, 0.0  ;;  %v982_v61 = vpop.f32.mrb[8].mxu0  ;;  %v1520_v25 = vpop.f32.mrb[8].mxu1 }
  0xf1   :  { %v459_v37 = vadd.f32 %v982_v61, %v1432_v47  ;;  %v453_v38 = vpop.f32.mrb[9].mxu0  ;;  %v1523_v22 = vpop.f32.mrb[9].mxu1  ;;  %v803_v63 = vmul.f32 %v1456_v1, %v579_v21 }
  0xf2   :  { %v802_v45 = vmul.f32 %v1458_v2, %v578_v41  ;;  %v832_v59 = vadd.f32 %v831_v40, %v801_v42  ;;  %v454_v0 = vadd.f32 %v453_v38, %v1434_v48 }
  0xf3   :  { %v581_v28 = vmax.f32 %v459_v37, 0.0 }
  0xf4   :  { %v833_v39 = vadd.f32 %v832_v59, %v802_v45  ;;  %v580_v29 = vmax.f32 %v454_v0, 0.0  ;;  %v985_v31 = vpop.f32.mrb[10].mxu0  ;;  %v1532_v33 = vpop.f32.mrb[10].mxu1 }
  0xf5   :  { %v469_v47 = vadd.f32 %v985_v31, %v1436_v49  ;;  %v463_v43 = vpop.f32.mrb[11].mxu0  ;;  %v1535_v36 = vpop.f32.mrb[11].mxu1  ;;  %v805_v62 = vmul.f32 %v1460_v3, %v581_v28 }
  0xf6   :  { %v804_v2 = vmul.f32 %v1462_v4, %v580_v29  ;;  %v834_v48 = vadd.f32 %v833_v39, %v803_v63  ;;  %v464_v41 = vadd.f32 %v463_v43, %v1438_v50  ;;  %v1547_v59 = vpop.permute.xlu1 %758  ;;  %v223_v50 = vpop.permute.xlu0 %222 }
  0xf7   :  { %v583_v1 = vmax.f32 %v469_v47, 0.0 }
  0xf8   :  { %v835_v44 = vadd.f32 %v834_v48, %v804_v2  ;;  %v582_v42 = vmax.f32 %v464_v41, 0.0  ;;  %v988_v40 = vpop.f32.mrb[12].mxu0  ;;  %v1540_v21 = vpop.f32.mrb[12].mxu1 }
  0xf9   :  { %v479_v61 = vadd.f32 %v988_v40, %v1440_v51  ;;  %v473_v37 = vpop.f32.mrb[13].mxu0  ;;  %v1543_v49 = vpop.f32.mrb[13].mxu1  ;;  %v807_v3 = vmul.f32 %v1464_v5, %v583_v1  ;;  %v499_v5 = vadd.f32 %v1492_v20, %v1448_v55 }
  0xfa   :  { %v806_v38 = vmul.f32 %v1466_v6, %v582_v42  ;;  %v836_v45 = vadd.f32 %v835_v44, %v805_v62  ;;  %v474_v4 = vadd.f32 %v473_v37, %v1442_v52  ;;  %v494_v6 = vadd.f32 %v1494_v23, %v1450_v56 }
  0xfb   :  { %v585_v63 = vmax.f32 %v479_v61, 0.0  ;;  %v504_v42 = vadd.f32 %v1502_v34, %v1454_v58  ;;  %v589_v40 = vmax.f32 %v499_v5, 0.0  ;;  %v514_v37 = vadd.f32 %v1507_v24, %v1482_v14 }
  0xfc   :  { %v837_v0 = vadd.f32 %v836_v45, %v806_v38  ;;  %v584_v39 = vmax.f32 %v474_v4, 0.0  ;;  %v991_v28 = vpop.f32.mrb[14].mxu0  ;;  %v1550_v29 = vpop.f32.mrb[14].mxu1  ;;  %v588_v1 = vmax.f32 %v494_v6, 0.0  ;;  %v519_v34 = vadd.f32 %v1504_v19, %v1486_v16  ;;  %v1619_v6 = vld [vmem:[#allocation7_spill] sm:$0xff] }
  0xfd   :  { %v489_v51 = vadd.f32 %v991_v28, %v1444_v53  ;;  %v483_v31 = vpop.f32.mrb[15].mxu0  ;;  %v1553_v47 = vpop.f32.mrb[15].mxu1  ;;  %v809_v48 = vmul.f32 %v1468_v7, %v585_v63  ;;  %v590_v61 = vmax.f32 %v504_v42, 0.0  ;;  %v813_v58 = vmul.f32 %v1476_v11, %v589_v40 }
  0xfe   :  { %v808_v52 = vmul.f32 %v1470_v8, %v584_v39  ;;  %v838_v43 = vadd.f32 %v837_v0, %v807_v3  ;;  %v484_v2 = vadd.f32 %v483_v31, %v1446_v54  ;;  %v228_v53 = vpop.permute.xlu0 %227  ;;  %v764_v8 = vpop.permute.xlu1 %763  ;;  %v509_v54 = vadd.f32 %v1500_v30, %v1452_v57 }
  0xff   :  { %v587_v62 = vmax.f32 %v489_v51, 0.0  ;;  %v812_v7 = vmul.f32 %v1478_v12, %v588_v1  ;;  %v814_v57 = vmul.f32 %v1480_v13, %v590_v61  ;;  %v524_v12 = vadd.f32 %v1517_v35, %v1490_v18  ;;  %v1618_v51 = vld [vmem:[#allocation6_spill] sm:$0xff] }
 0x100   :  { %v839_v41 = vadd.f32 %v838_v43, %v808_v52  ;;  %v586_v44 = vmax.f32 %v484_v2, 0.0  ;;  %v593_v14 = vmax.f32 %v519_v34, 0.0  ;;  %v529_v24 = vadd.f32 %v1514_v32, %v1498_v26 }
 0x101   :  { %v811_v55 = vmul.f32 %v1472_v9, %v587_v62  ;;  %v592_v9 = vmax.f32 %v514_v37, 0.0  ;;  %v594_v16 = vmax.f32 %v524_v12, 0.0  ;;  %v534_v19 = vadd.f32 %v1523_v22, %v1512_v27 }
 0x102   :  { %v810_v56 = vmul.f32 %v1474_v10, %v586_v44  ;;  %v840_v23 = vadd.f32 %v839_v41, %v809_v48  ;;  %v233_v45 = vpop.permute.xlu0 %232  ;;  %v591_v10 = vmax.f32 %v509_v54, 0.0  ;;  %v769_v3 = vpop.permute.xlu1 %768  ;;  %v817_v31 = vmul.f32 %v1618_v51, %v593_v14 }
 0x103   :  { %v816_v39 = vmul.f32 %v1488_v17, %v592_v9  ;;  %v595_v18 = vmax.f32 %v529_v24, 0.0  ;;  %v818_v52 = vmul.f32 %v1619_v6, %v594_v16  ;;  %v596_v26 = vmax.f32 %v534_v19, 0.0 }
 0x104   :  { %v841_v20 = vadd.f32 %v840_v23, %v810_v56  ;;  %v815_v0 = vmul.f32 %v1484_v15, %v591_v10  ;;  %v539_v15 = vadd.f32 %v1520_v25, %v1529_v46  ;;  %v544_v32 = vadd.f32 %v1535_v36, %v223_v50 }
 0x105   :  { %v819_v2 = vmul.f32 %v1527_v60, %v595_v18  ;;  %v549_v27 = vadd.f32 %v1532_v33, %v228_v53  ;;  %v820_v41 = vmul.f32 %v1547_v59, %v596_v26  ;;  %v554_v25 = vadd.f32 %v1543_v49, %v233_v45 }
 0x106   :  { %v842_v38 = vadd.f32 %v841_v20, %v811_v55  ;;  %v238_v63 = vpop.permute.xlu0 %237  ;;  %v774_v28 = vpop.permute.xlu1 %773  ;;  %v597_v5 = vmax.f32 %v539_v15, 0.0  ;;  %v598_v62 = vmax.f32 %v544_v32, 0.0 }
 0x107   :  { %v599_v1 = vmax.f32 %v549_v27, 0.0  ;;  %v559_v42 = vadd.f32 %v1540_v21, %v238_v63  ;;  %v600_v23 = vmax.f32 %v554_v25, 0.0 }
 0x108   :  { %v843_v4 = vadd.f32 %v842_v38, %v812_v7  ;;  %v821_v44 = vmul.f32 %v764_v8, %v597_v5  ;;  %v822_v56 = vmul.f32 %v769_v3, %v598_v62 }
 0x109   :  { %v823_v53 = vmul.f32 %v774_v28, %v599_v1  ;;  %v601_v54 = vmax.f32 %v559_v42, 0.0 }
 0x10a   :  { %v844_v30 = vadd.f32 %v843_v4, %v813_v58  ;;  %v243_v17 = vpop.permute.xlu0 %242  ;;  %v779_v48 = vpop.permute.xlu1 %778 }
 0x10b   :  { %v564_v60 = vadd.f32 %v1553_v47, %v243_v17  ;;  %v824_v20 = vmul.f32 %v779_v48, %v600_v23 }
 0x10c   :  { %v845_v11 = vadd.f32 %v844_v30, %v814_v57 }
 0x10d   :  { %v602_v49 = vmax.f32 %v564_v60, 0.0 }
 0x10e   :  { %v846_v13 = vadd.f32 %v845_v11, %v815_v0  ;;  %v248_v50 = vpop.permute.xlu0 %247  ;;  %v784_v33 = vpop.permute.xlu1 %783 }
 0x10f   :  { %v569_v59 = vadd.f32 %v1550_v29, %v248_v50  ;;  %v825_v8 = vmul.f32 %v784_v33, %v601_v54  ;;  %v866_v29 = vstv %s1614_s4  ;;  %s1040_s4 = scalar_lea.vmem %s885_s8, 32 }
 0x110   :  { %v847_v35 = vadd.f32 %v846_v13, %v816_v39  ;;  %p1042_p2 = scmp.lt.s32.totalorder %s1040_s4, %s1036_s9 }
 0x111   :  { %v603_v61 = vmax.f32 %v569_v59, 0.0 }
 0x112   :  { %v848_v43 = vadd.f32 %v847_v35, %v817_v31  ;;  %v794_v21 = vpop.permute.xlu1 %793  ;;  %v789_v38 = vpop.permute.xlu0 %788  ;;  %p1043_p3 = por %p1042_p2, %p1041_p1 }
 0x113   :  { %v826_v45 = vmul.f32 %v789_v38, %v602_v49  ;;  %v827_v10 = vmul.f32 %v794_v21, %v603_v61 }
 0x114   :  { %v849_v22 = vadd.f32 %v848_v43, %v818_v52  ;;  %p1044_p4 = pnand %p1043_p3, %p1037_p0 }
 0x116   :  { %v850_v46 = vadd.f32 %v849_v22, %v819_v2 }
 0x118   :  { %v851_v36 = vadd.f32 %v850_v46, %v820_v41 }
 0x11a   :  { %v852_v40 = vadd.f32 %v851_v36, %v821_v44 }
 0x11c   :  { %v853_v55 = vadd.f32 %v852_v40, %v822_v56 }
 0x11e   :  { %v854_v7 = vadd.f32 %v853_v55, %v823_v53 }
 0x120   :  { %v855_v37 = vadd.f32 %v854_v7, %v824_v20 }
 0x122   :  { %v856_v58 = vadd.f32 %v855_v37, %v825_v8 }
 0x124   :  { %v857_v34 = vadd.f32 %v856_v58, %v826_v45 }
 0x126   :  { %v858_v47 = vadd.f32 %v857_v34, %v827_v10 }
 0x128   :  { %v859_v4 = vrot.slane %v858_v47, 4 }
 0x12a   :  { %v860_v3 = vadd.f32 %v859_v4, %v858_v47 }
 0x12c   :  { %v861_v57 = vrot.slane %v860_v3, 2 }
 0x12e   :  { %v862_v9 = vadd.f32 %v861_v57, %v860_v3 }
 0x130   :  { %v863_v12 = vrot.slane %v862_v9, 1 }
 0x132   :  { %v864_v30 = vadd.f32 %v863_v12, %v862_v9 }
 0x134   :  { %v867_v0 = vadd.f32 %v866_v29, %v864_v30 }
 0x136   :  { %v868_v14 = vand.u32 2147483647, %v867_v0  ;;  %vm872_vm1 = vcmp.ge.f32.partialorder %v867_v0, 0.0 }
 0x138   :  { %v869_v24 = vsub.f32 0.0, %v868_v14 }
 0x13a   :  { %v870_v11 = vmul.f32 1.442695, %v869_v24 }
 0x13c   :  { %1032 = vpow2.f32 %v870_v11 }
 0x146   :  { %v1033_v63 = vpop.eup %1032 }
 0x147   :  { %v874_v39 = vadd.f32 1.0, %v1033_v63  ;;  %v873_v19 = vsel %vm872_vm1, 1.0, %v1033_v63 }
 0x149   :  { %1034 = vrcp.f32 %v874_v39 }
 0x153   :  { %v1035_v16 = vpop.eup %1034 }
 0x154   :  { %v876_v13 = vmul.f32 %v1035_v16, %v873_v19 }
 0x156   :  { %877 = vst [vmem:[#allocation3] sm:$0x1] %v876_v13 }
 0x157   :  { %1047 = shalt.err (!%p1044_p4)
}
 0x158   :  { %s1048_s0 = scalar_lea.hbm %s1615_s5, 16 }
 0x159   :  { %p1049_p5 = scmp.ne.s32.totalorder %s1615_s5, %s1048_s0  ;;  %p1052_p6 = scmp.lt.u32.totalorder %s1048_s0, %s1615_s5 }
 0x15b   :  { %p1054_p7 = pnand %p1052_p6, %p1049_p5 }
 0x15d   :  { %1057 = shalt.err (!%p1054_p7)
}
 0x15e   :  { %887 = dma.vmem_to_hbm [thread:$0]  %s885_s8, 16, %s1615_s5, [#allocation4]  }
 0x15f   :  { %1058 = dma.done.wait [#allocation4], 16  }
 0x160   :  { %1059 = vsyncadd [#allocation4], 4294967280 }
 0x161   :  { %891 = vsyncpa [#allocation4], 1 }

</bundles_post_ra>
